<compile_context>
chip_gen: v7x
topology: tpu7x:2x2x1
jax: 0.10.0
libtpu: 0.0.40
codegen_flags: <defaults>
</compile_context>

<pallas_src>
import functools

import jax
import jax.numpy as jnp
from jax import lax
from jax.experimental import pallas as pl
from jax.experimental.pallas import tpu as pltpu


_LANES = 128                              # lane width of the flattened slab
_TARGET_TILE_BYTES = 4 * 1024 * 1024      # per-input, per-pipeline-buffer tile target
_DEFAULT_MIN_PALLAS_ELEMENTS = 64 * 1024  # below this, fused XLA elementwise+mean wins


def _sublane_align(dtype) -> int:
    """Rows per packed (sublane) tile: 8 for f32, 16 for bf16, 32 for 8-bit."""
    itemsize = jnp.dtype(dtype).itemsize
    return 8 * max(1, 4 // max(1, itemsize))


def _num_tensorcores() -> int:
    """2 on megacore generations (v4 / v5p / v7x), 1 on v5e / v6e (conservative default)."""
    try:
        kind = jax.devices()[0].device_kind.lower()
    except Exception:
        return 1
    if any(tag in kind for tag in ("v4", "v5p", "v5 p", "v7")):
        return 2
    return 1


def _bce_elementwise_f32(x, y):
    # PyTorch F.binary_cross_entropy clamps the log terms at -100.
    log_x = jnp.maximum(jnp.log(x), -100.0)
    log_1mx = jnp.maximum(jnp.log(1.0 - x), -100.0)
    return -(y * log_x + (1.0 - y) * log_1mx)


def _bce_mean_ref(output, label):
    x = output.astype(jnp.float32)
    y = label.astype(jnp.float32)
    return jnp.mean(_bce_elementwise_f32(x, y))


def _make_bce_kernel(rows, tile_rows, tiles_per_core, need_mask):
    """Kernel over a (rows, 128) slab; writes one (8,128) partial-sum block per core."""

    def kernel(out_ref, lab_ref, part_ref, acc_ref):
        c = pl.program_id(0)
        j = pl.program_id(1)

        @pl.when(j == 0)
        def _init():
            acc_ref[...] = jnp.zeros_like(acc_ref)

        # Native-dtype loads; upcast to f32 in-register for the log/clamp math.
        x = out_ref[...].astype(jnp.float32)
        y = lab_ref[...].astype(jnp.float32)
        per_elem = _bce_elementwise_f32(x, y)

        if need_mask:
            # Static tail handling: zero contributions from rows past the real data
            # (partial boundary tile or phantom tile on the other core's share).
            row_start = (c * tiles_per_core + j) * tile_rows
            row_ids = lax.broadcasted_iota(jnp.int32, (tile_rows, _LANES), 0)
            per_elem = jnp.where(row_start + row_ids < rows, per_elem, 0.0)

        # Fold the (tile_rows, 128) tile onto the (8, 128) row accumulator: pure VPU adds,
        # no cross-lane reduce, tiny VMEM accumulator traffic per step.
        acc_ref[...] += per_elem.reshape(tile_rows // 8, 8, _LANES).sum(axis=0)

        @pl.when(j == pl.num_programs(1) - 1)
        def _finalize():
            part_ref[...] = acc_ref[...]      # plain unmasked (8,128) store

    return kernel


@functools.partial(jax.jit, static_argnames=("min_pallas_elements",))
def bert_similarity_loss(output, label, *,
                         min_pallas_elements=_DEFAULT_MIN_PALLAS_ELEMENTS):
    """Mean-reduced binary cross entropy, matching PyTorch F.binary_cross_entropy."""
    assert output.shape == label.shape
    n_total = int(output.size)

    align = max(_sublane_align(output.dtype), _sublane_align(label.dtype))
    use_kernel = (
        n_total % _LANES == 0
        and n_total >= max(int(min_pallas_elements), align * _LANES)
    )
    if not use_kernel:
        # Small or ragged inputs: XLA's fused elementwise+mean needs no extra copies and
        # the pallas_call launch / pipeline prologue would dominate.
        return _bce_mean_ref(output, label)

    rows = n_total // _LANES
    out2d = output.reshape(rows, _LANES)   # free reshape: no pad, no HBM copy
    lab2d = label.reshape(rows, _LANES)

    itemsize = max(jnp.dtype(output.dtype).itemsize, jnp.dtype(label.dtype).itemsize)
    target_rows = max(align, _TARGET_TILE_BYTES // (_LANES * itemsize))
    tile_rows = max(align, (min(target_rows, rows) // align) * align)

    tiles_total = -(-rows // tile_rows)
    ncores = _num_tensorcores() if tiles_total > 1 else 1
    tiles_per_core = -(-tiles_total // ncores)
    grid = (ncores, tiles_per_core)

    has_phantom = ncores * tiles_per_core != tiles_total
    need_mask = has_phantom or (rows % tile_rows != 0)
    last_block = tiles_total - 1

    if has_phantom:
        def in_map(c, j):
            return (jnp.minimum(c * tiles_per_core + j, last_block), 0)
    else:
        def in_map(c, j):
            return (c * tiles_per_core + j, 0)

    # Actual VMEM need: 2 inputs x 2 pipeline buffers x tile (+ tiny acc/out blocks).
    in_itemsizes = jnp.dtype(output.dtype).itemsize + jnp.dtype(label.dtype).itemsize
    vmem_need = 2 * tile_rows * _LANES * in_itemsizes + 64 * 1024
    vmem_limit = int(max(32 * 2**20, min(96 * 2**20, 2 * vmem_need)))

    kernel = _make_bce_kernel(rows, tile_rows, tiles_per_core, need_mask)

    partials = pl.pallas_call(
        kernel,
        out_shape=jax.ShapeDtypeStruct((ncores * 8, _LANES), jnp.float32),
        grid_spec=pltpu.PrefetchScalarGridSpec(
            num_scalar_prefetch=0,
            grid=grid,
            in_specs=[
                pl.BlockSpec((tile_rows, _LANES), in_map),
                pl.BlockSpec((tile_rows, _LANES), in_map),
            ],
            out_specs=pl.BlockSpec((8, _LANES), lambda c, j: (c, 0)),
            scratch_shapes=[pltpu.VMEM((8, _LANES), jnp.float32)],
        ),
        compiler_params=pltpu.CompilerParams(
            dimension_semantics=("parallel", "arbitrary"),
            vmem_limit_bytes=vmem_limit,
        ),
    )(out2d, lab2d)

    # Tiny glue: combine per-core partial sums and apply the mean.
    return jnp.sum(partials) / jnp.float32(n_total)


if __name__ == "__main__":
    key = jax.random.PRNGKey(0)
    k1, k2, k3, k4, k5, k6 = jax.random.split(key, 6)

    # Test 1: (16, 128) probabilities, hard labels -> exact-tiling kernel path.
    output1 = jax.nn.sigmoid(jax.random.normal(k1, (16, 128), dtype=jnp.float32))
    label1 = (jax.random.uniform(k2, (16, 128)) > 0.5).astype(jnp.float32)
    loss1 = bert_similarity_loss(output1, label1, min_pallas_elements=0)
    jax.block_until_ready(loss1)
    ref1 = _bce_mean_ref(output1, label1)
    assert jnp.allclose(loss1, ref1, rtol=1e-5, atol=1e-6), (loss1, ref1)

    # Test 2: (22, 128) soft labels -> partial last tile exercises in-kernel masking.
    output2 = jax.nn.sigmoid(jax.random.normal(k3, (22, 128), dtype=jnp.float32))
    label2 = jax.random.uniform(k4, (22, 128), dtype=jnp.float32)
    loss2 = bert_similarity_loss(output2, label2, min_pallas_elements=0)
    jax.block_until_ready(loss2)
    ref2 = _bce_mean_ref(output2, label2)
    assert jnp.allclose(loss2, ref2, rtol=1e-5, atol=1e-6), (loss2, ref2)

    # Test 3: bf16 probabilities (native-dtype loads, 16-row sublane alignment).
    output3 = jax.nn.sigmoid(jax.random.normal(k5, (64, 128), dtype=jnp.float32)).astype(jnp.bfloat16)
    label3 = (jax.random.uniform(k6, (64, 128)) > 0.5).astype(jnp.float32)
    loss3 = bert_similarity_loss(output3, label3, min_pallas_elements=0)
    jax.block_until_ready(loss3)
    ref3 = _bce_mean_ref(output3, label3)
    assert jnp.allclose(loss3, ref3, rtol=1e-5, atol=1e-6), (loss3, ref3)

    # Test 4: ragged / tiny input -> pure-JAX fast path (no pad, no copy).
    output4 = jax.nn.sigmoid(jax.random.normal(k1, (7, 33), dtype=jnp.float32))
    label4 = jax.random.uniform(k2, (7, 33), dtype=jnp.float32)
    loss4 = bert_similarity_loss(output4, label4)
    jax.block_until_ready(loss4)
    ref4 = _bce_mean_ref(output4, label4)
    assert jnp.allclose(loss4, ref4, rtol=1e-5, atol=1e-6), (loss4, ref4)

    print("KERNEL_OK")
</pallas_src>

<mosaic_0001>
module attributes {stable_mosaic.version = 11 : i64} {
  func.func @kernel(%arg0: i32, %arg1: i32, %arg2: memref<16x128xf32, #tpu.memory_space<vmem>>, %arg3: memref<16x128xf32, #tpu.memory_space<vmem>>, %arg4: memref<8x128xf32, #tpu.memory_space<vmem>>, %arg5: memref<8x128xf32, #tpu.memory_space<vmem>>) attributes {dimension_semantics = [#tpu.dimension_semantics<parallel>, #tpu.dimension_semantics<arbitrary>], iteration_bounds = array<i64: 1, 1>, scalar_prefetch = 0 : i64, scratch_operands = 1 : i64, tpu.core_type = #tpu.core_type<tc>, window_params = [{transform_indices = @transform_0, window_bounds = array<i64: 16, 128>}, {transform_indices = @transform_1, window_bounds = array<i64: 16, 128>}, {transform_indices = @transform_2, window_bounds = array<i64: 8, 128>}]} {
    %c0_i32 = arith.constant 0 : i32
    %0 = arith.cmpi eq, %arg1, %c0_i32 : i32
    %1 = arith.extui %0 : i1 to i32
    %c0_i32_0 = arith.constant 0 : i32
    %2 = arith.cmpi ne, %1, %c0_i32_0 : i32
    scf.if %2 {
      %cst_15 = arith.constant 0.000000e+00 : f32
      %28 = vector.broadcast %cst_15 : f32 to vector<8x128xf32>
      %c0_16 = arith.constant 0 : index
      %c0_17 = arith.constant 0 : index
      %29 = vector.load %arg5[%c0_16, %c0_17] : memref<8x128xf32, #tpu.memory_space<vmem>>, vector<8x128xf32>
      tpu.vector_store %arg5[%c0_16, %c0_17], %28 {strides = array<i32>} : memref<8x128xf32, #tpu.memory_space<vmem>>, vector<8x128xf32>,
    } else {
    }
    %c0 = arith.constant 0 : index
    %c0_1 = arith.constant 0 : index
    %3 = vector.load %arg2[%c0, %c0_1] : memref<16x128xf32, #tpu.memory_space<vmem>>, vector<16x128xf32>
    %c0_2 = arith.constant 0 : index
    %c0_3 = arith.constant 0 : index
    %4 = vector.load %arg3[%c0_2, %c0_3] : memref<16x128xf32, #tpu.memory_space<vmem>>, vector<16x128xf32>
    %5 = math.log %3 : vector<16x128xf32>
    %cst = arith.constant -1.000000e+02 : f32
    %6 = vector.broadcast %cst : f32 to vector<16x128xf32>
    %7 = arith.maximumf %5, %6 : vector<16x128xf32>
    %cst_4 = arith.constant 1.000000e+00 : f32
    %8 = vector.broadcast %cst_4 : f32 to vector<16x128xf32>
    %9 = arith.subf %8, %3 : vector<16x128xf32>
    %10 = math.log %9 : vector<16x128xf32>
    %cst_5 = arith.constant -1.000000e+02 : f32
    %11 = vector.broadcast %cst_5 : f32 to vector<16x128xf32>
    %12 = arith.maximumf %10, %11 : vector<16x128xf32>
    %13 = arith.mulf %4, %7 : vector<16x128xf32>
    %cst_6 = arith.constant 1.000000e+00 : f32
    %14 = vector.broadcast %cst_6 : f32 to vector<16x128xf32>
    %15 = arith.subf %14, %4 : vector<16x128xf32>
    %16 = arith.mulf %15, %12 : vector<16x128xf32>
    %17 = arith.addf %13, %16 : vector<16x128xf32>
    %cst_7 = arith.constant 0.000000e+00 : f32
    %18 = vector.broadcast %cst_7 : f32 to vector<16x128xf32>
    %19 = arith.subf %18, %17 : vector<16x128xf32>
    %c0_8 = arith.constant 0 : index
    %c0_9 = arith.constant 0 : index
    %20 = vector.load %arg5[%c0_8, %c0_9] : memref<8x128xf32, #tpu.memory_space<vmem>>, vector<8x128xf32>
    %21 = vector.shape_cast %19 : vector<16x128xf32> to vector<2x8x128xf32>
    %cst_10 = arith.constant dense<0.000000e+00> : vector<8x128xf32>
    %22 = vector.multi_reduction <add>, %21, %cst_10 [0] : vector<2x8x128xf32> to vector<8x128xf32>
    %23 = arith.addf %20, %22 : vector<8x128xf32>
    %c0_11 = arith.constant 0 : index
    %c0_12 = arith.constant 0 : index
    %24 = vector.load %arg5[%c0_11, %c0_12] : memref<8x128xf32, #tpu.memory_space<vmem>>, vector<8x128xf32>
    tpu.vector_store %arg5[%c0_11, %c0_12], %23 {strides = array<i32>} : memref<8x128xf32, #tpu.memory_space<vmem>>, vector<8x128xf32>,
    %c0_i32_13 = arith.constant 0 : i32
    %25 = arith.cmpi eq, %arg1, %c0_i32_13 : i32
    %26 = arith.extui %25 : i1 to i32
    %c0_i32_14 = arith.constant 0 : i32
    %27 = arith.cmpi ne, %26, %c0_i32_14 : i32
    scf.if %27 {
      %c0_15 = arith.constant 0 : index
      %c0_16 = arith.constant 0 : index
      %28 = vector.load %arg5[%c0_15, %c0_16] : memref<8x128xf32, #tpu.memory_space<vmem>>, vector<8x128xf32>
      %c0_17 = arith.constant 0 : index
      %c0_18 = arith.constant 0 : index
      %29 = vector.load %arg4[%c0_17, %c0_18] : memref<8x128xf32, #tpu.memory_space<vmem>>, vector<8x128xf32>
      tpu.vector_store %arg4[%c0_17, %c0_18], %28 {strides = array<i32>} : memref<8x128xf32, #tpu.memory_space<vmem>>, vector<8x128xf32>,
    } else {
    }
    return
  }
  func.func @transform_0(%arg0: i32, %arg1: i32) -> (i32, i32) {
    %c1_i32 = arith.constant 1 : i32
    %0 = arith.muli %arg0, %c1_i32 : i32
    %1 = arith.addi %0, %arg1 : i32
    %c0_i32 = arith.constant 0 : i32
    %c0_i32_0 = arith.constant 0 : i32
    return %1, %c0_i32 : i32, i32
  }
  func.func @transform_1(%arg0: i32, %arg1: i32) -> (i32, i32) {
    %c1_i32 = arith.constant 1 : i32
    %0 = arith.muli %arg0, %c1_i32 : i32
    %1 = arith.addi %0, %arg1 : i32
    %c0_i32 = arith.constant 0 : i32
    %c0_i32_0 = arith.constant 0 : i32
    return %1, %c0_i32 : i32, i32
  }
  func.func @transform_2(%arg0: i32, %arg1: i32) -> (i32, i32) {
    %c0_i32 = arith.constant 0 : i32
    %c0_i32_0 = arith.constant 0 : i32
    return %arg0, %c0_i32 : i32, i32
  }
}

</mosaic_0001>

<bundles_post_ra>
// kernel: bert_similarity_loss.1
= control target key start
LH: loop header
LB: loop body
LE: loop exit
PB: predicated region body
PF: predicated region fallthrough
CT: control target
= control target key end

     0   :  { %7 = vsyncpa [#allocation4], 0  ;;  %s205_s0 = inlined_call_operand.hbm [shape: f32[16,128], index: 0, kind: input, shape index: {}]   ;;  %s206_s1 = inlined_call_operand.hbm [shape: f32[16,128], index: 1, kind: input, shape index: {}]   ;;  %s207_s2 = inlined_call_operand.vmem [shape: f32[8,128], index: 2, kind: output, shape index: {}]  }
   0x1   :  { %8 = vsyncpa [#allocation6], 0  ;;  %s159_s9 = smov [#allocation3]   ;;  %s111_s13 = scalar_lea.hbm %s205_s0, 256 }
   0x2   :  { %s18_s10 = sshll.u32 %s159_s9, 4  ;;  %p112_p0 = scmp.ne.s32.totalorder %s205_s0, %s111_s13  ;;  %s19_s10 = int_to_ptr.vmem [resolvable:$true] %s18_s10 }
   0x3   :  { %p115_p1 = scmp.lt.u32.totalorder %s111_s13, %s205_s0 }
   0x5   :  { %p117_p2 = pnand %p115_p1, %p112_p0 }
   0x7   :  { %120 = shalt.err (!%p117_p2)
}
   0x8   :  { %s121_s18 = scalar_lea.vmem %s19_s10, 256  ;;  %p126_p4 = scmp.lt.s32.totalorder %s19_s10, %s19_s10 }
   0x9   :  { %p122_p3 = scmp.ne.s32.totalorder %s19_s10, %s121_s18  ;;  %p127_p5 = scmp.lt.s32.totalorder %s121_s18, %s121_s18 }
   0xb   :  { %p128_p6 = por %p127_p5, %p126_p4 }
   0xd   :  { %p129_p7 = pnand %p128_p6, %p122_p3 }
   0xf   :  { %132 = shalt.err (!%p129_p7)
}
  0x10   :  { %s160_s19 = smov 128   ;;  %s161_s20 = smov 8  }
  0x11   :  { %24 = dma.hbm_to_vmem [thread:$0]  %s205_s0, 256, %s19_s10, [#allocation4], %s160_s19, %s160_s19, %s161_s20  }
  0x12   :  { %s162_s23 = smov [#allocation5]   ;;  %s133_s27 = scalar_lea.hbm %s206_s1, 256 }
  0x13   :  { %s34_s24 = sshll.u32 %s162_s23, 4  ;;  %p134_p8 = scmp.ne.s32.totalorder %s206_s1, %s133_s27  ;;  %s35_s24 = int_to_ptr.vmem [resolvable:$true] %s34_s24 }
  0x14   :  { %p137_p9 = scmp.lt.u32.totalorder %s133_s27, %s206_s1 }
  0x16   :  { %p139_p10 = pnand %p137_p9, %p134_p8 }
  0x18   :  { %142 = shalt.err (!%p139_p10)
}
  0x19   :  { %s143_s4 = scalar_lea.vmem %s35_s24, 256  ;;  %p148_p12 = scmp.lt.s32.totalorder %s35_s24, %s35_s24 }
  0x1a   :  { %p144_p11 = scmp.ne.s32.totalorder %s35_s24, %s143_s4  ;;  %p149_p13 = scmp.lt.s32.totalorder %s143_s4, %s143_s4 }
  0x1c   :  { %p150_p0 = por %p149_p13, %p148_p12 }
  0x1e   :  { %p151_p1 = pnand %p150_p0, %p144_p11 }
  0x20   :  { %154 = shalt.err (!%p151_p1)
}
  0x21   :  { %40 = dma.hbm_to_vmem [thread:$0]  %s206_s1, 256, %s35_s24, [#allocation6], %s160_s19, %s160_s19, %s161_s20  }
  0x22   :  { %155 = dma.done.wait [#allocation4], 256  }
  0x23   :  { %156 = vsyncadd [#allocation4], 4294967040 }
  0x24   :  { %157 = dma.done.wait [#allocation6], 256  }
  0x25   :  { %158 = vsyncadd [#allocation6], 4294967040  ;;  %v56_v0 = vld [vmem:[#allocation3] sm:$0xff]  ;;  %v57_v1 = vld [vmem:[#allocation3 + $0x8] sm:$0xff] }
  0x26   :  { %103 = vlog2.f32 %v56_v0  ;;  %v66_v2 = vsub.f32 1.0, %v56_v0  ;;  %v67_v3 = vsub.f32 1.0, %v57_v1  ;;  %v58_v5 = vld [vmem:[#allocation5] sm:$0xff]  ;;  %v59_v7 = vld [vmem:[#allocation5 + $0x8] sm:$0xff] }
  0x27   :  { %105 = vlog2.f32 %v57_v1  ;;  %v76_v14 = vsub.f32 1.0, %v58_v5  ;;  %v77_v17 = vsub.f32 1.0, %v59_v7 }
  0x28   :  { %107 = vlog2.f32 %v66_v2 }
  0x29   :  { %109 = vlog2.f32 %v67_v3 }
  0x30   :  { %v104_v4 = vpop.eup %103 }
  0x31   :  { %v106_v6 = vpop.eup %105  ;;  %v61_v8 = vmul.f32 0.6931472, %v104_v4 }
  0x32   :  { %v108_v9 = vpop.eup %107  ;;  %v63_v10 = vmul.f32 0.6931472, %v106_v6 }
  0x33   :  { %v110_v11 = vpop.eup %109  ;;  %v64_v12 = vmax.f32 %v61_v8, -100.0  ;;  %v69_v13 = vmul.f32 0.6931472, %v108_v9 }
  0x34   :  { %v65_v15 = vmax.f32 %v63_v10, -100.0  ;;  %v71_v16 = vmul.f32 0.6931472, %v110_v11 }
  0x35   :  { %v72_v18 = vmax.f32 %v69_v13, -100.0  ;;  %v74_v19 = vmul.f32 %v64_v12, %v58_v5 }
  0x36   :  { %v73_v20 = vmax.f32 %v71_v16, -100.0  ;;  %v75_v21 = vmul.f32 %v65_v15, %v59_v7 }
  0x37   :  { %v78_v22 = vmul.f32 %v76_v14, %v72_v18 }
  0x38   :  { %v79_v23 = vmul.f32 %v77_v17, %v73_v20 }
  0x39   :  { %v80_v24 = vadd.f32 %v78_v22, %v74_v19 }
  0x3a   :  { %v81_v25 = vadd.f32 %v79_v23, %v75_v21 }
  0x3b   :  { %v82_v26 = vsub.f32 0.0, %v80_v24 }
  0x3c   :  { %v83_v27 = vsub.f32 0.0, %v81_v25 }
  0x3e   :  { %v85_v28 = vadd.f32 %v83_v27, %v82_v26 }
  0x40   :  { %92 = vst [vmem:[%s207_s2] sm:$0xff] %v85_v28 }
  0x41   :  { %97 = vsyncpa [#allocation4], 1 }
  0x42   :  { %98 = vsyncpa [#allocation6], 1 }

</bundles_post_ra>
